<compile_context>
chip_gen: v7x
topology: tpu7x:2x2x1
jax: 0.10.0
libtpu: 0.0.40
codegen_flags: <defaults>
</compile_context>

<pallas_src>
import math
from functools import partial

import jax
import jax.numpy as jnp
from jax.experimental import pallas as pl
from jax.experimental.pallas import tpu as pltpu


# ----------------------------------------------------------------------------
# Kernel
# ----------------------------------------------------------------------------
def _make_kernel(add_fixation: bool):
    def kernel(x_ref, w_ref, *rest):
        if add_fixation:
            fix_ref, o_ref = rest
        else:
            (o_ref,) = rest

        # One lane-dense MXU matmul: (batch_tile, K) @ (K, output) with f32 accum.
        acc = jnp.dot(x_ref[...], w_ref[...],
                      preferred_element_type=jnp.float32)
        if add_fixation:
            acc = acc + fix_ref[...]          # (1, output) broadcasts over rows
        o_ref[...] = acc.astype(o_ref.dtype)

    return kernel


# ----------------------------------------------------------------------------
# Parameter prep (weight-only; hoist/cache across forwards)
# ----------------------------------------------------------------------------
def prepare_combiner_params(input_weight, num_stimuli: int,
                            compute_dtype=jnp.bfloat16):
    """Fold the QR + per-stimulus masking into one effective weight matrix.

    Returns W_eff of shape (num_stimuli * sensory_pop, output_size) such that
        forward(x) = x.reshape(batch, -1) @ W_eff (+ fixation)
    matches the PyTorch module exactly (up to QR numerics).
    """
    sensory_pop, output_size = input_weight.shape
    assert output_size % num_stimuli == 0
    cols = output_size // num_stimuli

    # TODO(synk): the QR factorization itself has no clean Pallas equivalent;
    # it is weight-only setup and stays in plain JAX (cache across forwards).
    q, r = jnp.linalg.qr(jnp.asarray(input_weight, jnp.float32).T)
    # q: (output, output), r: (output, sensory_pop)

    blocks = []
    for i in range(num_stimuli):
        sl = slice(cols * i, cols * (i + 1))
        # (Q[:, sl] @ R[sl, :]).T == R[sl, :].T @ Q[:, sl].T : (sensory, output)
        blocks.append(r[sl, :].T @ q[:, sl].T)
    w_eff = jnp.concatenate(blocks, axis=0)        # (num_stimuli*sensory, output)
    return w_eff.astype(compute_dtype)


# ----------------------------------------------------------------------------
# Tiling heuristic
# ----------------------------------------------------------------------------
def _choose_batch_tile(batch: int) -> int:
    if batch < 64:
        # Single exact block (block dim == array dim, no OOB rows at all).
        return batch
    # >= 2 grid steps so v7x's two TensorCores both get work ("parallel" axis);
    # cap the tile to keep per-step VMEM modest on every generation.
    half = (batch + 1) // 2
    tile = ((half + 7) // 8) * 8
    return max(8, min(tile, 512))


# ----------------------------------------------------------------------------
# Forward
# ----------------------------------------------------------------------------
def qr_slot_stimulus_combiner_apply(sensory_response, w_eff, fixation_token,
                                    add_fixation: bool, *,
                                    min_pallas_batch: int = 128):
    """Forward with precomputed W_eff from prepare_combiner_params.

    sensory_response: (batch, num_stimuli, sensory_pop)
    w_eff:            (num_stimuli * sensory_pop, output_size)  [bf16]
    fixation_token:   (output_size,)
    """
    batch, num_stimuli, sensory_pop = sensory_response.shape
    k_dim, output_size = w_eff.shape
    assert k_dim == num_stimuli * sensory_pop

    compute_dtype = w_eff.dtype
    # Free contiguous reshape; bf16 halves the HBM traffic of the only
    # batch-scaled tensor (accumulation stays f32 inside the kernel).
    x2d = sensory_response.reshape(batch, k_dim).astype(compute_dtype)
    fix2d = jnp.asarray(fixation_token, jnp.float32).reshape(1, output_size)

    # Tiny batches: pallas_call launch/DMA setup overhead dominates a single
    # (batch, 1024) x (1024, 128) gemm — let XLA fuse it.
    if batch < min_pallas_batch:
        out = jnp.dot(x2d, w_eff, preferred_element_type=jnp.float32)
        if add_fixation:
            out = out + fix2d
        return out

    batch_tile = _choose_batch_tile(batch)
    grid = (pl.cdiv(batch, batch_tile),)

    in_specs = [
        pl.BlockSpec((batch_tile, k_dim), lambda b: (b, 0)),        # x tile
        pl.BlockSpec((k_dim, output_size), lambda b: (0, 0)),       # W_eff (resident)
    ]
    args = [x2d, w_eff]
    if add_fixation:
        in_specs.append(pl.BlockSpec((1, output_size), lambda b: (0, 0)))
        args.append(fix2d)

    bytes_accessed = (x2d.size * x2d.dtype.itemsize
                      + w_eff.size * w_eff.dtype.itemsize
                      + (fix2d.size * 4 if add_fixation else 0)
                      + batch * output_size * 4)
    cost = pl.CostEstimate(flops=2 * batch * k_dim * output_size,
                           transcendentals=0,
                           bytes_accessed=bytes_accessed)

    out = pl.pallas_call(
        _make_kernel(add_fixation),
        out_shape=jax.ShapeDtypeStruct((batch, output_size), jnp.float32),
        grid=grid,
        in_specs=in_specs,
        out_specs=pl.BlockSpec((batch_tile, output_size), lambda b: (b, 0)),
        compiler_params=pltpu.CompilerParams(
            dimension_semantics=("parallel",)),
        cost_estimate=cost,
    )(*args)
    return out


def qr_slot_stimulus_combiner(sensory_response, input_weight, fixation_token,
                              num_stimuli: int, add_fixation: bool):
    """Convenience wrapper: recomputes the QR fold every call. For repeated
    calls with fixed weights, call prepare_combiner_params once instead."""
    w_eff = prepare_combiner_params(input_weight, num_stimuli)
    return qr_slot_stimulus_combiner_apply(
        sensory_response, w_eff, fixation_token, add_fixation)


# ----------------------------------------------------------------------------
# Plain-JAX reference (transcription of the PyTorch forward, f32)
# ----------------------------------------------------------------------------
def _reference(sensory_response, input_weight, fixation_token,
               num_stimuli, add_fixation):
    output_size = input_weight.shape[1]
    cols = output_size // num_stimuli
    q, r = jnp.linalg.qr(jnp.asarray(input_weight, jnp.float32).T)
    total = jnp.zeros((sensory_response.shape[0], output_size), jnp.float32)
    with jax.default_matmul_precision("float32"):
        for i in range(num_stimuli):
            sl = slice(cols * i, cols * (i + 1))
            masked_q = jnp.zeros_like(q).at[:, sl].set(q[:, sl])
            masked_weight = (masked_q @ r).T
            total = total + sensory_response[:, i] @ masked_weight
    if add_fixation:
        total = total + fixation_token
    return total


# ----------------------------------------------------------------------------
# Demo / self-test
# ----------------------------------------------------------------------------
if __name__ == "__main__":
    # Small, module-consistent shapes.
    sensory_pop_size = 256
    output_size = 128
    num_stimuli = 4

    key = jax.random.PRNGKey(0)
    k_w, k_fix, k_x1, k_x2 = jax.random.split(key, 4)

    # Deterministic synthetic parameters (shapes from __init__):
    # xavier_uniform(zeros(sensory_pop_size, output_size))
    bound = math.sqrt(6.0 / (sensory_pop_size + output_size))
    input_weight = jax.random.uniform(
        k_w, (sensory_pop_size, output_size), jnp.float32, -bound, bound)
    # randn(output_size) / output_size
    fixation_token = (jax.random.normal(k_fix, (output_size,), jnp.float32)
                      / output_size)

    # QR fold hoisted out of the forward (weight-only).
    w_eff = prepare_combiner_params(input_weight, num_stimuli)

    # (batch=4, force Pallas path) and (batch=300, natural Pallas path with a
    # 2-step "parallel" grid and a ragged last block).
    test_cases = ((4, k_x1, 0), (300, k_x2, 128))

    for batch, k_x, min_pallas_batch in test_cases:
        sensory_response = jax.random.normal(
            k_x, (batch, num_stimuli, sensory_pop_size), jnp.float32)

        for add_fix in (True, False):
            out = qr_slot_stimulus_combiner_apply(
                sensory_response, w_eff, fixation_token,
                add_fixation=add_fix, min_pallas_batch=min_pallas_batch)
            out = jax.block_until_ready(out)

            ref = _reference(sensory_response, input_weight, fixation_token,
                             num_stimuli, add_fixation=add_fix)
            ref = jax.block_until_ready(ref)

            assert out.shape == (batch, output_size)
            err = float(jnp.max(jnp.abs(out - ref)))
            # bf16 inputs / f32 accumulation vs f32 reference: ~1e-2-level diffs.
            assert bool(jnp.allclose(out, ref, rtol=5e-2, atol=5e-2)), (
                f"batch={batch} add_fixation={add_fix}: max abs err {err}")

    print("KERNEL_OK")
</pallas_src>

<mosaic_0001>
module attributes {stable_mosaic.version = 11 : i64} {
  func.func @kernel(%arg0: i32, %arg1: memref<4x1024xbf16, #tpu.memory_space<vmem>>, %arg2: memref<1024x128xbf16, #tpu.memory_space<vmem>>, %arg3: memref<1x128xf32, #tpu.memory_space<vmem>>, %arg4: memref<4x128xf32, #tpu.memory_space<vmem>>) attributes {dimension_semantics = [#tpu.dimension_semantics<parallel>], iteration_bounds = array<i64: 1>, scalar_prefetch = 0 : i64, scratch_operands = 0 : i64, tpu.core_type = #tpu.core_type<tc>, window_params = [{transform_indices = @transform_0, window_bounds = array<i64: 4, 1024>}, {pipeline_mode = #tpu.pipeline_mode<synchronous>, transform_indices = @transform_1, window_bounds = array<i64: 1024, 128>}, {pipeline_mode = #tpu.pipeline_mode<synchronous>, transform_indices = @transform_2, window_bounds = array<i64: 1, 128>}, {transform_indices = @transform_3, window_bounds = array<i64: 4, 128>}]} {
    %c0 = arith.constant 0 : index
    %c0_0 = arith.constant 0 : index
    %0 = vector.load %arg1[%c0, %c0_0] : memref<4x1024xbf16, #tpu.memory_space<vmem>>, vector<4x1024xbf16>
    %c0_1 = arith.constant 0 : index
    %c0_2 = arith.constant 0 : index
    %1 = vector.load %arg2[%c0_1, %c0_2] : memref<1024x128xbf16, #tpu.memory_space<vmem>>, vector<1024x128xbf16>
    %cst = arith.constant dense<0.000000e+00> : vector<4x128xf32>
    %2 = tpu.matmul %0, %1, %cst {dimension_numbers = #tpu.dot_dimension_numbers<[1], [0], [0], [1], [0, 0, 1, 1], [], []>} : vector<4x1024xbf16>, vector<1024x128xbf16>, vector<4x128xf32> -> vector<4x128xf32>
    %c0_3 = arith.constant 0 : index
    %c0_4 = arith.constant 0 : index
    %3 = vector.load %arg3[%c0_3, %c0_4] : memref<1x128xf32, #tpu.memory_space<vmem>>, vector<1x128xf32>
    %4 = vector.broadcast %3 : vector<1x128xf32> to vector<4x128xf32>
    %5 = arith.addf %2, %4 : vector<4x128xf32>
    %c0_5 = arith.constant 0 : index
    %c0_6 = arith.constant 0 : index
    %6 = vector.load %arg4[%c0_5, %c0_6] : memref<4x128xf32, #tpu.memory_space<vmem>>, vector<4x128xf32>
    tpu.vector_store %arg4[%c0_5, %c0_6], %5 {strides = array<i32>} : memref<4x128xf32, #tpu.memory_space<vmem>>, vector<4x128xf32>,
    return
  }
  func.func @transform_0(%arg0: i32) -> (i32, i32) {
    %c0_i32 = arith.constant 0 : i32
    %c0_i32_0 = arith.constant 0 : i32
    return %arg0, %c0_i32 : i32, i32
  }
  func.func @transform_1(%arg0: i32) -> (i32, i32) {
    %c0_i32 = arith.constant 0 : i32
    %c0_i32_0 = arith.constant 0 : i32
    %c0_i32_1 = arith.constant 0 : i32
    return %c0_i32, %c0_i32_0 : i32, i32
  }
  func.func @transform_2(%arg0: i32) -> (i32, i32) {
    %c0_i32 = arith.constant 0 : i32
    %c0_i32_0 = arith.constant 0 : i32
    %c0_i32_1 = arith.constant 0 : i32
    return %c0_i32, %c0_i32_0 : i32, i32
  }
  func.func @transform_3(%arg0: i32) -> (i32, i32) {
    %c0_i32 = arith.constant 0 : i32
    %c0_i32_0 = arith.constant 0 : i32
    return %arg0, %c0_i32 : i32, i32
  }
}

</mosaic_0001>

<bundles_post_ra>
// kernel: tpu_custom_call.1
= control target key start
LH: loop header
LB: loop body
LE: loop exit
PB: predicated region body
PF: predicated region fallthrough
CT: control target
= control target key end

     0   :  { %8 = vsyncpa [#allocation3], 0  ;;  %s1159_s0 = inlined_call_operand.hbm [shape: bf16[4,1024], index: 0, kind: input, shape index: {}]   ;;  %s1160_s1 = inlined_call_operand.hbm [shape: bf16[1024,128], index: 1, kind: input, shape index: {}]   ;;  %s1161_s2 = inlined_call_operand.vmem [shape: f32[1,128], index: 2, kind: input, shape index: {}]   ;;  %s1162_s3 = inlined_call_operand.hbm [shape: f32[4,128], index: 3, kind: output, shape index: {}]  }
   0x1   :  { %9 = vsyncpa [#allocation6], 0 }
   0x2   :  { %10 = vsyncpa [#allocation4], 0  ;;  %s1081_s12 = smov [#allocation2]   ;;  %s1082_s14 = smov [#allocation5]  }
   0x3   :  { %s17_s13 = sshll.u32 %s1081_s12, 4  ;;  %s26_s15 = sshll.u32 %s1082_s14, 4  ;;  %s18_s13 = int_to_ptr.vmem [resolvable:$true] %s17_s13  ;;  %s1107_s15 = int_to_ptr.vmem [resolvable:$true] %s26_s15 }
   0x4   :  { %s1009_s18 = scalar_lea.hbm %s1159_s0, 256 }
   0x5   :  { %p1010_p0 = scmp.ne.s32.totalorder %s1159_s0, %s1009_s18  ;;  %p1013_p1 = scmp.lt.u32.totalorder %s1009_s18, %s1159_s0 }
   0x7   :  { %p1015_p2 = pnand %p1013_p1, %p1010_p0 }
   0x9   :  { %1018 = shalt.err (!%p1015_p2)
}
   0xa   :  { %s1019_s23 = scalar_lea.vmem %s18_s13, 256  ;;  %p1024_p4 = scmp.lt.s32.totalorder %s18_s13, %s18_s13 }
   0xb   :  { %p1020_p3 = scmp.ne.s32.totalorder %s18_s13, %s1019_s23  ;;  %p1025_p5 = scmp.lt.s32.totalorder %s1019_s23, %s1019_s23 }
   0xd   :  { %p1026_p6 = por %p1025_p5, %p1024_p4 }
   0xf   :  { %p1027_p7 = pnand %p1026_p6, %p1020_p3 }
  0x11   :  { %1030 = shalt.err (!%p1027_p7)
}
  0x12   :  { %20 = dma.hbm_to_vmem [thread:$0]  %s1159_s0, 256, %s18_s13, [#allocation3]  }
  0x13   :  { %s1031_s28 = scalar_lea.hbm %s1160_s1, 8192 }
  0x14   :  { %p1032_p8 = scmp.ne.s32.totalorder %s1160_s1, %s1031_s28  ;;  %p1035_p9 = scmp.lt.u32.totalorder %s1031_s28, %s1160_s1 }
  0x16   :  { %p1037_p10 = pnand %p1035_p9, %p1032_p8 }
  0x18   :  { %1040 = shalt.err (!%p1037_p10)
}
  0x19   :  { %s1041_s6 = scalar_lea.vmem %s1107_s15, 8192  ;;  %p1046_p12 = scmp.lt.s32.totalorder %s1107_s15, %s1107_s15 }
  0x1a   :  { %p1042_p11 = scmp.ne.s32.totalorder %s1107_s15, %s1041_s6  ;;  %p1047_p13 = scmp.lt.s32.totalorder %s1041_s6, %s1041_s6 }
  0x1c   :  { %p1048_p0 = por %p1047_p13, %p1046_p12 }
  0x1e   :  { %p1049_p1 = pnand %p1048_p0, %p1042_p11 }
  0x20   :  { %1052 = shalt.err (!%p1049_p1)
}
  0x21   :  { %s1083_s0 = smov 64   ;;  %s1084_s7 = smov 4  }
  0x22   :  { %32 = dma.hbm_to_vmem [thread:$0]  %s1160_s1, 8192, %s1107_s15, [#allocation6], %s1083_s0, %s1083_s0, %s1084_s7  }
  0x23   :  { %1075 = dma.done.wait [#allocation3], 256  }
  0x24   :  { %1076 = vsyncadd [#allocation3], 4294967040 }
  0x25   :  { %1077 = dma.done.wait [#allocation6], 8192  }
  0x26   :  { %1078 = vsyncadd [#allocation6], 4294959104  ;;  %v943_v0 = vld [vmem:[#allocation5 + $0x40] sm:$0xff]   ;;  %v947_v4 = vld [vmem:[#allocation5 + $0x48] sm:$0xff]   ;;  %v1085_v22 = vmov 1983009808   ;;  %v185_v24 = vlaneseq }
  0x27   :  { %v944_v1 = vld [vmem:[#allocation5 + $0xc0] sm:$0xff]   ;;  %849 = vmatprep.subr.bf16.mxu0 %v943_v0  ;;  %v948_v5 = vld [vmem:[#allocation5 + $0xc8] sm:$0xff]   ;;  %v951_v8 = vld [vmem:[#allocation5 + $0x50] sm:$0xff]   ;;  %v183_v23 = vunpack.c.l.s4 %v1085_v22  ;;  %s1086_s11 = smov [#allocation7]  }
  0x28   :  { %v945_v2 = vld [vmem:[#allocation5] sm:$0xff]   ;;  %871 = vmatprep.subr.bf16.mxu1 %v944_v1  ;;  %v949_v6 = vld [vmem:[#allocation5 + $0x8] sm:$0xff]   ;;  %v952_v9 = vld [vmem:[#allocation5 + $0xd0] sm:$0xff]   ;;  %v186_v30 = vshrl.u32 %v185_v24, 7 }
  0x29   :  { %v946_v3 = vld [vmem:[#allocation5 + $0x80] sm:$0xff]   ;;  %850 = vmatpush3.bf16.msra.mxu0 %v945_v2  ;;  %v950_v7 = vld [vmem:[#allocation5 + $0x88] sm:$0xff]   ;;  %v953_v10 = vld [vmem:[#allocation5 + $0x10] sm:$0xff]   ;;  %v184_v29 = vunpack.c.0.s8 %v183_v23 }
  0x2a   :  { %872 = vmatpush3.bf16.msra.mxu1 %v946_v3  ;;  %851 = vmatprep.subr.bf16.mxu0 %v947_v4  ;;  %v954_v11 = vld [vmem:[#allocation5 + $0x90] sm:$0xff]   ;;  %v955_v12 = vld [vmem:[#allocation5 + $0x58] sm:$0xff]   ;;  %v959_v16 = vld [vmem:[#allocation5 + $0x60] sm:$0xff]  }
  0x2b   :  { %873 = vmatprep.subr.bf16.mxu1 %v948_v5  ;;  %v956_v13 = vld [vmem:[#allocation5 + $0xd8] sm:$0xff]   ;;  %v960_v17 = vld [vmem:[#allocation5 + $0xe0] sm:$0xff]   ;;  %v963_v20 = vld [vmem:[#allocation5 + $0x68] sm:$0xff]   ;;  %v1138_v35 = vsub.s32 %v184_v29, %v186_v30 }
  0x2c   :  { %v957_v14 = vld [vmem:[#allocation5 + $0x18] sm:$0xff]   ;;  %v961_v18 = vld [vmem:[#allocation5 + $0x20] sm:$0xff]   ;;  %v964_v21 = vld [vmem:[#allocation5 + $0xe8] sm:$0xff]  }
  0x2d   :  { %852 = vmatpush3.bf16.msra.mxu0 %v949_v6  ;;  %v958_v15 = vld [vmem:[#allocation5 + $0x98] sm:$0xff]   ;;  %v962_v19 = vld [vmem:[#allocation5 + $0xa0] sm:$0xff]   ;;  %v965_v25 = vld [vmem:[#allocation5 + $0x28] sm:$0xff]  }
  0x2e   :  { %874 = vmatpush3.bf16.msra.mxu1 %v950_v7  ;;  %853 = vmatprep.subr.bf16.mxu0 %v951_v8  ;;  %v966_v26 = vld [vmem:[#allocation5 + $0xa8] sm:$0xff]   ;;  %v967_v27 = vld [vmem:[#allocation5 + $0x70] sm:$0xff]   ;;  %v971_v33 = vld [vmem:[#allocation5 + $0x78] sm:$0xff]  }
  0x2f   :  { %875 = vmatprep.subr.bf16.mxu1 %v952_v9  ;;  %v968_v28 = vld [vmem:[#allocation5 + $0xf0] sm:$0xff]   ;;  %v972_v34 = vld [vmem:[#allocation5 + $0xf8] sm:$0xff]   ;;  %v976_v41 = vld [vmem:[#allocation5 + $0x140] sm:$0xff]  }
  0x30   :  { %v969_v31 = vld [vmem:[#allocation5 + $0x30] sm:$0xff]   ;;  %v973_v36 = vld [vmem:[#allocation5 + $0x38] sm:$0xff]   ;;  %v977_v42 = vld [vmem:[#allocation5 + $0x1c0] sm:$0xff]  }
  0x31   :  { %854 = vmatpush3.bf16.msra.mxu0 %v953_v10  ;;  %v970_v32 = vld [vmem:[#allocation5 + $0xb0] sm:$0xff]   ;;  %v974_v37 = vld [vmem:[#allocation5 + $0xb8] sm:$0xff]   ;;  %v978_v45 = vld [vmem:[#allocation5 + $0x100] sm:$0xff]  }
  0x32   :  { %876 = vmatpush3.bf16.msra.mxu1 %v954_v11  ;;  %855 = vmatprep.subr.bf16.mxu0 %v955_v12  ;;  %v42_v38 = vld [vmem:[#allocation2] sm:$0xff]  ;;  %v979_v46 = vld [vmem:[#allocation5 + $0x180] sm:$0xff]   ;;  %v980_v48 = vld [vmem:[#allocation5 + $0x148] sm:$0xff]  }
  0x33   :  { %877 = vmatprep.subr.bf16.mxu1 %v956_v13  ;;  %v188_v39 = vrot.slane %v42_v38, %v1138_v35  ;;  %v181_v40 = vcombine.high %v42_v38, %v42_v38  ;;  %v981_v49 = vld [vmem:[#allocation5 + $0x1c8] sm:$0xff]   ;;  %v984_v52 = vld [vmem:[#allocation5 + $0x150] sm:$0xff]   ;;  %v988_v56 = vld [vmem:[#allocation5 + $0x158] sm:$0xff]  }
  0x34   :  { %v982_v50 = vld [vmem:[#allocation5 + $0x108] sm:$0xff]   ;;  %v985_v53 = vld [vmem:[#allocation5 + $0x1d0] sm:$0xff]   ;;  %v989_v57 = vld [vmem:[#allocation5 + $0x1d8] sm:$0xff]  }
  0x35   :  { %856 = vmatpush3.bf16.msra.mxu0 %v957_v14  ;;  %v196_v43 = vcombine.high %v188_v39, %v188_v39  ;;  %v195_v44 = vrot.slane %v181_v40, %v1138_v35  ;;  %v983_v51 = vld [vmem:[#allocation5 + $0x188] sm:$0xff]   ;;  %v986_v54 = vld [vmem:[#allocation5 + $0x110] sm:$0xff]   ;;  %v990_v58 = vld [vmem:[#allocation5 + $0x118] sm:$0xff]  }
  0x36   :  { %878 = vmatpush3.bf16.msra.mxu1 %v958_v15  ;;  %857 = vmatprep.subr.bf16.mxu0 %v959_v16  ;;  %v987_v55 = vld [vmem:[#allocation5 + $0x190] sm:$0xff]   ;;  %v991_v59 = vld [vmem:[#allocation5 + $0x198] sm:$0xff]   ;;  %v992_v60 = vld [vmem:[#allocation5 + $0x160] sm:$0xff]  }
  0x37   :  { %879 = vmatprep.subr.bf16.mxu1 %v960_v17  ;;  %639 = vmatprep.mubr.bf16.mxu0 %v196_v43  ;;  %v197_v47 = vcombine.high %v195_v44, %v195_v44  ;;  %v993_v61 = vld [vmem:[#allocation5 + $0x1e0] sm:$0xff]   ;;  %v996_v0 = vld [vmem:[#allocation5 + $0x168] sm:$0xff]   ;;  %v1000_v4 = vld [vmem:[#allocation5 + $0x170] sm:$0xff]  }
  0x38   :  { %v994_v62 = vld [vmem:[#allocation5 + $0x120] sm:$0xff]   ;;  %v997_v1 = vld [vmem:[#allocation5 + $0x1e8] sm:$0xff]   ;;  %v1001_v5 = vld [vmem:[#allocation5 + $0x1f0] sm:$0xff]  }
  0x39   :  { %858 = vmatpush3.bf16.msra.mxu0 %v961_v18  ;;  %679 = vmatprep.mubr.bf16.mxu1 %v197_v47  ;;  %v995_v63 = vld [vmem:[#allocation5 + $0x1a0] sm:$0xff]   ;;  %v998_v2 = vld [vmem:[#allocation5 + $0x128] sm:$0xff]   ;;  %v1002_v6 = vld [vmem:[#allocation5 + $0x130] sm:$0xff]  }
  0x3a   :  { %880 = vmatpush3.bf16.msra.mxu1 %v962_v19  ;;  %859 = vmatprep.subr.bf16.mxu0 %v963_v20  ;;  %v999_v3 = vld [vmem:[#allocation5 + $0x1a8] sm:$0xff]   ;;  %v1003_v7 = vld [vmem:[#allocation5 + $0x1b0] sm:$0xff]   ;;  %v1004_v8 = vld [vmem:[#allocation5 + $0x178] sm:$0xff]  }
  0x3b   :  { %881 = vmatprep.subr.bf16.mxu1 %v964_v21  ;;  %v1005_v9 = vld [vmem:[#allocation5 + $0x1f8] sm:$0xff]   ;;  %v784_v19 = vld [vmem:[%s1161_s2] ss:$0 sm:$0xff]  ;;  %s774_s2 = sshll.u32 %s1086_s11, 4  ;;  %s775_s2 = int_to_ptr.vmem [resolvable:$true] %s774_s2 }
  0x3c   :  { %v1006_v10 = vld [vmem:[#allocation5 + $0x138] sm:$0xff]   ;;  %s1053_s12 = scalar_lea.vmem %s775_s2, 64  ;;  %p1058_p3 = scmp.lt.s32.totalorder %s775_s2, %s775_s2 }
  0x3d   :  { %860 = vmatpush3.bf16.msra.mxu0 %v965_v25  ;;  %v43_v11 = vld [vmem:[#allocation2 + $0x8] sm:$0xff]  ;;  %p1054_p2 = scmp.ne.s32.totalorder %s775_s2, %s1053_s12  ;;  %p1059_p4 = scmp.lt.s32.totalorder %s1053_s12, %s1053_s12 }
  0x3e   :  { %882 = vmatpush3.bf16.msra.mxu1 %v966_v26  ;;  %861 = vmatprep.subr.bf16.mxu0 %v967_v27  ;;  %v1007_v12 = vld [vmem:[#allocation5 + $0x1b8] sm:$0xff]   ;;  %v205_v13 = vrot.slane %v43_v11, %v1138_v35  ;;  %v198_v14 = vcombine.high %v43_v11, %v43_v11 }
  0x3f   :  { %883 = vmatprep.subr.bf16.mxu1 %v968_v28  ;;  %p1060_p5 = por %p1059_p4, %p1058_p3 }
  0x40   :  { %v213_v15 = vcombine.high %v205_v13, %v205_v13  ;;  %v212_v16 = vrot.slane %v198_v14, %v1138_v35 }
  0x41   :  { %862 = vmatpush3.bf16.msra.mxu0 %v969_v31  ;;  %p1061_p6 = pnand %p1060_p5, %p1054_p2 }
  0x42   :  { %884 = vmatpush3.bf16.msra.mxu1 %v970_v32  ;;  %863 = vmatprep.subr.bf16.mxu0 %v971_v33  ;;  %v214_v17 = vcombine.high %v212_v16, %v212_v16 }
  0x43   :  { %885 = vmatprep.subr.bf16.mxu1 %v972_v34 }
  0x45   :  { %864 = vmatpush3.bf16.msra.mxu0 %v973_v36 }
  0x46   :  { %886 = vmatpush3.bf16.msra.mxu1 %v974_v37  ;;  %893 = vmatprep.subr.bf16.mxu0 %v976_v41 }
  0x47   :  { %915 = vmatprep.subr.bf16.mxu1 %v977_v42 }
  0x48   :  { %640 = vmatmul.mubr.bf16.vlgmr.msra.gmra.mrb[0].mxu0 %v188_v39 }
  0x49   :  { %894 = vmatpush3.bf16.msra.mxu0 %v978_v45  ;;  %680 = vmatmul.mubr.bf16.vlgmr.msra.gmra.mrb[0].mxu1 %v195_v44 }
  0x4a   :  { %895 = vmatprep.subr.bf16.mxu0 %v980_v48  ;;  %916 = vmatpush3.bf16.msra.mxu1 %v979_v46 }
  0x4b   :  { %917 = vmatprep.subr.bf16.mxu1 %v981_v49  ;;  %719 = vmatprep.mubr.bf16.mxu0 %v213_v15 }
  0x4c   :  { %759 = vmatprep.mubr.bf16.mxu1 %v214_v17 }
  0x4d   :  { %896 = vmatpush3.bf16.msra.mxu0 %v982_v50 }
  0x4e   :  { %897 = vmatprep.subr.bf16.mxu0 %v984_v52  ;;  %918 = vmatpush3.bf16.msra.mxu1 %v983_v51 }
  0x4f   :  { %919 = vmatprep.subr.bf16.mxu1 %v985_v53 }
  0x51   :  { %898 = vmatpush3.bf16.msra.mxu0 %v986_v54 }
  0x52   :  { %899 = vmatprep.subr.bf16.mxu0 %v988_v56  ;;  %920 = vmatpush3.bf16.msra.mxu1 %v987_v55 }
  0x53   :  { %921 = vmatprep.subr.bf16.mxu1 %v989_v57 }
  0x55   :  { %900 = vmatpush3.bf16.msra.mxu0 %v990_v58 }
  0x56   :  { %901 = vmatprep.subr.bf16.mxu0 %v992_v60  ;;  %922 = vmatpush3.bf16.msra.mxu1 %v991_v59 }
  0x57   :  { %923 = vmatprep.subr.bf16.mxu1 %v993_v61 }
  0x59   :  { %902 = vmatpush3.bf16.msra.mxu0 %v994_v62 }
  0x5a   :  { %903 = vmatprep.subr.bf16.mxu0 %v996_v0  ;;  %924 = vmatpush3.bf16.msra.mxu1 %v995_v63 }
  0x5b   :  { %925 = vmatprep.subr.bf16.mxu1 %v997_v1 }
  0x5d   :  { %904 = vmatpush3.bf16.msra.mxu0 %v998_v2 }
  0x5e   :  { %905 = vmatprep.subr.bf16.mxu0 %v1000_v4  ;;  %926 = vmatpush3.bf16.msra.mxu1 %v999_v3 }
  0x5f   :  { %927 = vmatprep.subr.bf16.mxu1 %v1001_v5 }
  0x61   :  { %906 = vmatpush3.bf16.msra.mxu0 %v1002_v6 }
  0x62   :  { %907 = vmatprep.subr.bf16.mxu0 %v1004_v8  ;;  %928 = vmatpush3.bf16.msra.mxu1 %v1003_v7 }
  0x63   :  { %929 = vmatprep.subr.bf16.mxu1 %v1005_v9 }
  0x65   :  { %908 = vmatpush3.bf16.msra.mxu0 %v1006_v10 }
  0x66   :  { %930 = vmatpush3.bf16.msra.mxu1 %v1007_v12 }
  0x68   :  { %720 = vmatmul.mubr.bf16.vlgmr.msra.gmra.mrb[4].mxu0 %v205_v13 }
  0x69   :  { %760 = vmatmul.mubr.bf16.vlgmr.msra.gmra.mrb[4].mxu1 %v212_v16 }
 0x11b   :  { %v865_v18 = vpop.f32.mrb[0].mxu0 }
 0x11c   :  { %v866_v20 = vpop.f32.mrb[1].mxu0  ;;  %v887_v21 = vpop.f32.mrb[0].mxu1 }
 0x11d   :  { %v867_v22 = vadd.f32 %v866_v20, %v865_v18  ;;  %v868_v23 = vpop.f32.mrb[2].mxu0  ;;  %v888_v24 = vpop.f32.mrb[1].mxu1 }
 0x11e   :  { %v869_v25 = vpop.f32.mrb[3].mxu0  ;;  %v889_v27 = vadd.f32 %v888_v24, %v887_v21  ;;  %v890_v28 = vpop.f32.mrb[2].mxu1 }
 0x11f   :  { %v642_v26 = vadd.f32 %v867_v22, %v784_v19  ;;  %v891_v29 = vpop.f32.mrb[3].mxu1 }
 0x121   :  { %v682_v30 = vadd.f32 %v889_v27, %v642_v26 }
 0x13b   :  { %v909_v31 = vpop.f32.mrb[4].mxu0 }
 0x13c   :  { %v910_v32 = vpop.f32.mrb[5].mxu0  ;;  %v931_v33 = vpop.f32.mrb[4].mxu1 }
 0x13d   :  { %v911_v34 = vadd.f32 %v910_v32, %v909_v31  ;;  %v912_v35 = vpop.f32.mrb[6].mxu0  ;;  %v932_v36 = vpop.f32.mrb[5].mxu1 }
 0x13e   :  { %v913_v37 = vpop.f32.mrb[7].mxu0  ;;  %v933_v39 = vadd.f32 %v932_v36, %v931_v33  ;;  %v934_v40 = vpop.f32.mrb[6].mxu1 }
 0x13f   :  { %v722_v38 = vadd.f32 %v911_v34, %v682_v30  ;;  %v935_v41 = vpop.f32.mrb[7].mxu1 }
 0x141   :  { %v762_v42 = vadd.f32 %v933_v39, %v722_v38 }
 0x143   :  { %767 = vst [vmem:[#allocation7] sm:$0xf] %v762_v42 }
 0x144   :  { %1064 = shalt.err (!%p1061_p6)
}
 0x145   :  { %s1065_s15 = scalar_lea.hbm %s1162_s3, 64 }
 0x146   :  { %p1066_p7 = scmp.ne.s32.totalorder %s1162_s3, %s1065_s15  ;;  %p1069_p8 = scmp.lt.u32.totalorder %s1065_s15, %s1162_s3 }
 0x148   :  { %p1071_p9 = pnand %p1069_p8, %p1066_p7 }
 0x14a   :  { %1074 = shalt.err (!%p1071_p9)
}
 0x14b   :  { %777 = dma.vmem_to_hbm [thread:$0]  %s775_s2, 64, %s1162_s3, [#allocation4]  }
 0x14c   :  { %1079 = dma.done.wait [#allocation4], 64  }
 0x14d   :  { %1080 = vsyncadd [#allocation4], 4294967232 }
 0x14e   :  { %781 = vsyncpa [#allocation3], 1 }
 0x14f   :  { %782 = vsyncpa [#allocation6], 1 }
 0x150   :  { %783 = vsyncpa [#allocation4], 1 }

</bundles_post_ra>
